<compile_context>
chip_gen: v6e
topology: v6e:2x2x1
jax: 0.10.0
libtpu: 0.0.40
codegen_flags: <defaults>
</compile_context>

<pallas_src>
import jax
import jax.numpy as jnp
from jax.experimental import pallas as pl
from jax.experimental.pallas import tpu as pltpu

LANE = 128  # lane-dense padded width for hidden2 / output


def dqn_mlp_kernel(x_ref, w1_ref, b1_ref, w2_ref, b2_ref, w3_ref, b3_ref, o_ref):
    """Fused MLP on one (TB, D_in) batch tile. Weights already transposed to (in, out)."""
    x = x_ref[...]                                               # (TB, D_in) bf16

    # Layer 1: x @ W1t + b1, ReLU     (W1t: (D_in, 128) bf16, b1: (1, 128) f32)
    h1 = jnp.dot(x, w1_ref[...], preferred_element_type=jnp.float32)
    h1 = jnp.maximum(h1 + b1_ref[...], 0.0)

    # Layer 2: h1 @ W2t + b2, ReLU    (W2t zero-padded to (128, 128))
    h2 = jnp.dot(h1.astype(jnp.bfloat16), w2_ref[...],
                 preferred_element_type=jnp.float32)
    h2 = jnp.maximum(h2 + b2_ref[...], 0.0)

    # Layer 3: h2 @ W3t + b3 (raw Q-values; W3t zero-padded to (128, 128))
    out = jnp.dot(h2.astype(jnp.bfloat16), w3_ref[...],
                  preferred_element_type=jnp.float32)
    o_ref[...] = (out + b3_ref[...]).astype(o_ref.dtype)         # lane-dense (TB, 128)


def _round_up(n, m):
    return ((n + m - 1) // m) * m


@jax.jit
def dqn_forward(x, w1, b1, w2, b2, w3, b3):
    """x: (B, d_in) f32.  w*: PyTorch-layout (out, in) f32.  b*: (out,) f32."""
    B, d_in = x.shape
    hid1 = w1.shape[0]          # 128
    hid2 = w2.shape[0]          # 64
    d_out = w3.shape[0]

    # ---- Pre-transpose + zero-pad weights/biases to lane-dense layouts ----
    w1t = w1.T.astype(jnp.bfloat16)                                       # (d_in, 128)
    w2t = jnp.zeros((hid1, LANE), jnp.bfloat16).at[:, :hid2].set(
        w2.T.astype(jnp.bfloat16))                                        # (128, 128)
    w3t = jnp.zeros((LANE, LANE), jnp.bfloat16).at[:hid2, :d_out].set(
        w3.T.astype(jnp.bfloat16))                                        # (128, 128)
    b1p = b1.reshape(1, hid1).astype(jnp.float32)                         # (1, 128)
    b2p = jnp.zeros((1, LANE), jnp.float32).at[:, :hid2].set(
        b2.reshape(1, hid2))                                              # (1, 128)
    b3p = jnp.zeros((1, LANE), jnp.float32).at[:, :d_out].set(
        b3.reshape(1, d_out))                                             # (1, 128)

    # ---- Batch tiling: TB-row tiles, batch zero-padded to a multiple of TB ----
    TB = 512 if B >= 512 else _round_up(B, 16)   # 16 = bf16 sublane pack
    Bp = _round_up(B, TB)
    xb = x.astype(jnp.bfloat16)
    if Bp != B:
        xb = jnp.pad(xb, ((0, Bp - B), (0, 0)))

    out_padded = pl.pallas_call(
        dqn_mlp_kernel,
        out_shape=jax.ShapeDtypeStruct((Bp, LANE), jnp.float32),
        grid=(Bp // TB,),
        in_specs=[
            pl.BlockSpec((TB, d_in), lambda i: (i, 0)),     # x tile (pipelined)
            pl.BlockSpec((d_in, hid1), lambda i: (0, 0)),   # weights stay resident
            pl.BlockSpec((1, hid1), lambda i: (0, 0)),
            pl.BlockSpec((hid1, LANE), lambda i: (0, 0)),
            pl.BlockSpec((1, LANE), lambda i: (0, 0)),
            pl.BlockSpec((LANE, LANE), lambda i: (0, 0)),
            pl.BlockSpec((1, LANE), lambda i: (0, 0)),
        ],
        out_specs=pl.BlockSpec((TB, LANE), lambda i: (i, 0)),
        compiler_params=pltpu.CompilerParams(
            dimension_semantics=("parallel",)),              # shards batch across TCs (v7x)
    )(xb, w1t, b1p, w2t, b2p, w3t, b3p)

    return out_padded[:B, :d_out]


def init_linear_params(key, in_features, out_features):
    """Deterministic init mimicking PyTorch nn.Linear default (uniform +/- 1/sqrt(fan_in))."""
    kw, kb = jax.random.split(key)
    bound = 1.0 / jnp.sqrt(jnp.float32(in_features))
    w = jax.random.uniform(kw, (out_features, in_features), jnp.float32,
                           minval=-bound, maxval=bound)
    b = jax.random.uniform(kb, (out_features,), jnp.float32,
                           minval=-bound, maxval=bound)
    return w, b


if __name__ == "__main__":
    # Small shapes consistent with DQN(input_dim, output_dim)
    batch = 8
    input_dim = 32
    output_dim = 8

    key = jax.random.PRNGKey(0)
    kx, k1, k2, k3 = jax.random.split(key, 4)

    x = jax.random.normal(kx, (batch, input_dim), jnp.float32)
    w1, b1 = init_linear_params(k1, input_dim, 128)
    w2, b2 = init_linear_params(k2, 128, 64)
    w3, b3 = init_linear_params(k3, 64, output_dim)

    out = dqn_forward(x, w1, b1, w2, b2, w3, b3)
    jax.block_until_ready(out)
    assert out.shape == (batch, output_dim)

    # Reference 1: same math as the kernel (bf16 operands, f32 accumulation).
    xb = x.astype(jnp.bfloat16)
    h1 = jnp.maximum(
        jnp.dot(xb, w1.T.astype(jnp.bfloat16), preferred_element_type=jnp.float32)
        + b1[None, :], 0.0)
    h2 = jnp.maximum(
        jnp.dot(h1.astype(jnp.bfloat16), w2.T.astype(jnp.bfloat16),
                preferred_element_type=jnp.float32) + b2[None, :], 0.0)
    ref_bf16 = jnp.dot(h2.astype(jnp.bfloat16), w3.T.astype(jnp.bfloat16),
                       preferred_element_type=jnp.float32) + b3[None, :]
    assert jnp.allclose(out, ref_bf16, atol=1e-3, rtol=1e-3)

    # Reference 2: pure-f32 PyTorch-equivalent math (loose tol due to bf16 matmuls).
    h1f = jnp.maximum(x @ w1.T + b1[None, :], 0.0)
    h2f = jnp.maximum(h1f @ w2.T + b2[None, :], 0.0)
    ref_f32 = h2f @ w3.T + b3[None, :]
    assert jnp.allclose(out, ref_f32, atol=5e-2, rtol=5e-2)

    print("KERNEL_OK")
</pallas_src>

<mosaic_0001>
module attributes {stable_mosaic.version = 11 : i64} {
  func.func @dqn_mlp_kernel(%arg0: i32, %arg1: memref<16x32xbf16, #tpu.memory_space<vmem>>, %arg2: memref<32x128xbf16, #tpu.memory_space<vmem>>, %arg3: memref<1x128xf32, #tpu.memory_space<vmem>>, %arg4: memref<128x128xbf16, #tpu.memory_space<vmem>>, %arg5: memref<1x128xf32, #tpu.memory_space<vmem>>, %arg6: memref<128x128xbf16, #tpu.memory_space<vmem>>, %arg7: memref<1x128xf32, #tpu.memory_space<vmem>>, %arg8: memref<16x128xf32, #tpu.memory_space<vmem>>) attributes {dimension_semantics = [#tpu.dimension_semantics<parallel>], iteration_bounds = array<i64: 1>, scalar_prefetch = 0 : i64, scratch_operands = 0 : i64, tpu.core_type = #tpu.core_type<tc>, window_params = [{transform_indices = @transform_0, window_bounds = array<i64: 16, 32>}, {pipeline_mode = #tpu.pipeline_mode<synchronous>, transform_indices = @transform_1, window_bounds = array<i64: 32, 128>}, {pipeline_mode = #tpu.pipeline_mode<synchronous>, transform_indices = @transform_2, window_bounds = array<i64: 1, 128>}, {pipeline_mode = #tpu.pipeline_mode<synchronous>, transform_indices = @transform_3, window_bounds = array<i64: 128, 128>}, {pipeline_mode = #tpu.pipeline_mode<synchronous>, transform_indices = @transform_4, window_bounds = array<i64: 1, 128>}, {pipeline_mode = #tpu.pipeline_mode<synchronous>, transform_indices = @transform_5, window_bounds = array<i64: 128, 128>}, {pipeline_mode = #tpu.pipeline_mode<synchronous>, transform_indices = @transform_6, window_bounds = array<i64: 1, 128>}, {transform_indices = @transform_7, window_bounds = array<i64: 16, 128>}]} {
    %c0 = arith.constant 0 : index
    %c0_0 = arith.constant 0 : index
    %0 = vector.load %arg1[%c0, %c0_0] : memref<16x32xbf16, #tpu.memory_space<vmem>>, vector<16x32xbf16>
    %c0_1 = arith.constant 0 : index
    %c0_2 = arith.constant 0 : index
    %1 = vector.load %arg2[%c0_1, %c0_2] : memref<32x128xbf16, #tpu.memory_space<vmem>>, vector<32x128xbf16>
    %cst = arith.constant dense<0.000000e+00> : vector<16x128xf32>
    %2 = tpu.matmul %0, %1, %cst {dimension_numbers = #tpu.dot_dimension_numbers<[1], [0], [0], [1], [0, 0, 1, 1], [], []>} : vector<16x32xbf16>, vector<32x128xbf16>, vector<16x128xf32> -> vector<16x128xf32>
    %c0_3 = arith.constant 0 : index
    %c0_4 = arith.constant 0 : index
    %3 = vector.load %arg3[%c0_3, %c0_4] : memref<1x128xf32, #tpu.memory_space<vmem>>, vector<1x128xf32>
    %4 = vector.broadcast %3 : vector<1x128xf32> to vector<16x128xf32>
    %5 = arith.addf %2, %4 : vector<16x128xf32>
    %cst_5 = arith.constant 0.000000e+00 : f32
    %6 = vector.broadcast %cst_5 : f32 to vector<16x128xf32>
    %7 = arith.maximumf %5, %6 : vector<16x128xf32>
    %8 = arith.truncf %7 : vector<16x128xf32> to vector<16x128xbf16>
    %c0_6 = arith.constant 0 : index
    %c0_7 = arith.constant 0 : index
    %9 = vector.load %arg4[%c0_6, %c0_7] : memref<128x128xbf16, #tpu.memory_space<vmem>>, vector<128x128xbf16>
    %cst_8 = arith.constant dense<0.000000e+00> : vector<16x128xf32>
    %10 = tpu.matmul %8, %9, %cst_8 {dimension_numbers = #tpu.dot_dimension_numbers<[1], [0], [0], [1], [0, 0, 1, 1], [], []>} : vector<16x128xbf16>, vector<128x128xbf16>, vector<16x128xf32> -> vector<16x128xf32>
    %c0_9 = arith.constant 0 : index
    %c0_10 = arith.constant 0 : index
    %11 = vector.load %arg5[%c0_9, %c0_10] : memref<1x128xf32, #tpu.memory_space<vmem>>, vector<1x128xf32>
    %12 = vector.broadcast %11 : vector<1x128xf32> to vector<16x128xf32>
    %13 = arith.addf %10, %12 : vector<16x128xf32>
    %cst_11 = arith.constant 0.000000e+00 : f32
    %14 = vector.broadcast %cst_11 : f32 to vector<16x128xf32>
    %15 = arith.maximumf %13, %14 : vector<16x128xf32>
    %16 = arith.truncf %15 : vector<16x128xf32> to vector<16x128xbf16>
    %c0_12 = arith.constant 0 : index
    %c0_13 = arith.constant 0 : index
    %17 = vector.load %arg6[%c0_12, %c0_13] : memref<128x128xbf16, #tpu.memory_space<vmem>>, vector<128x128xbf16>
    %cst_14 = arith.constant dense<0.000000e+00> : vector<16x128xf32>
    %18 = tpu.matmul %16, %17, %cst_14 {dimension_numbers = #tpu.dot_dimension_numbers<[1], [0], [0], [1], [0, 0, 1, 1], [], []>} : vector<16x128xbf16>, vector<128x128xbf16>, vector<16x128xf32> -> vector<16x128xf32>
    %c0_15 = arith.constant 0 : index
    %c0_16 = arith.constant 0 : index
    %19 = vector.load %arg7[%c0_15, %c0_16] : memref<1x128xf32, #tpu.memory_space<vmem>>, vector<1x128xf32>
    %20 = vector.broadcast %19 : vector<1x128xf32> to vector<16x128xf32>
    %21 = arith.addf %18, %20 : vector<16x128xf32>
    %c0_17 = arith.constant 0 : index
    %c0_18 = arith.constant 0 : index
    %22 = vector.load %arg8[%c0_17, %c0_18] : memref<16x128xf32, #tpu.memory_space<vmem>>, vector<16x128xf32>
    tpu.vector_store %arg8[%c0_17, %c0_18], %21 {strides = array<i32>} : memref<16x128xf32, #tpu.memory_space<vmem>>, vector<16x128xf32>,
    return
  }
  func.func @transform_0(%arg0: i32) -> (i32, i32) {
    %c0_i32 = arith.constant 0 : i32
    %c0_i32_0 = arith.constant 0 : i32
    return %arg0, %c0_i32 : i32, i32
  }
  func.func @transform_1(%arg0: i32) -> (i32, i32) {
    %c0_i32 = arith.constant 0 : i32
    %c0_i32_0 = arith.constant 0 : i32
    %c0_i32_1 = arith.constant 0 : i32
    return %c0_i32, %c0_i32_0 : i32, i32
  }
  func.func @transform_2(%arg0: i32) -> (i32, i32) {
    %c0_i32 = arith.constant 0 : i32
    %c0_i32_0 = arith.constant 0 : i32
    %c0_i32_1 = arith.constant 0 : i32
    return %c0_i32, %c0_i32_0 : i32, i32
  }
  func.func @transform_3(%arg0: i32) -> (i32, i32) {
    %c0_i32 = arith.constant 0 : i32
    %c0_i32_0 = arith.constant 0 : i32
    %c0_i32_1 = arith.constant 0 : i32
    return %c0_i32, %c0_i32_0 : i32, i32
  }
  func.func @transform_4(%arg0: i32) -> (i32, i32) {
    %c0_i32 = arith.constant 0 : i32
    %c0_i32_0 = arith.constant 0 : i32
    %c0_i32_1 = arith.constant 0 : i32
    return %c0_i32, %c0_i32_0 : i32, i32
  }
  func.func @transform_5(%arg0: i32) -> (i32, i32) {
    %c0_i32 = arith.constant 0 : i32
    %c0_i32_0 = arith.constant 0 : i32
    %c0_i32_1 = arith.constant 0 : i32
    return %c0_i32, %c0_i32_0 : i32, i32
  }
  func.func @transform_6(%arg0: i32) -> (i32, i32) {
    %c0_i32 = arith.constant 0 : i32
    %c0_i32_0 = arith.constant 0 : i32
    %c0_i32_1 = arith.constant 0 : i32
    return %c0_i32, %c0_i32_0 : i32, i32
  }
  func.func @transform_7(%arg0: i32) -> (i32, i32) {
    %c0_i32 = arith.constant 0 : i32
    %c0_i32_0 = arith.constant 0 : i32
    return %arg0, %c0_i32 : i32, i32
  }
}

</mosaic_0001>

<bundles_post_ra>
// kernel: dqn_forward.1
= control target key start
LH: loop header
LB: loop body
LE: loop exit
PB: predicated region body
PF: predicated region fallthrough
CT: control target
= control target key end

     0   :  { %v451_v0 = vmov 0.0   ;;  %vm452_vm0 = vmmov 0   ;;  %vm57_vm1 = vcmask 261120   ;;  %s589_s1 = inlined_call_operand.vmem [shape: bf16[32,128], index: 1, kind: input, shape index: {}]   ;;  %s590_s3 = inlined_call_operand.vmem [shape: bf16[128,128], index: 3, kind: input, shape index: {}]   ;;  %s591_s0 = inlined_call_operand.vmem [shape: bf16[16,32], index: 0, kind: input, shape index: {}]   ;;  %s592_s5 = inlined_call_operand.vmem [shape: bf16[128,128], index: 5, kind: input, shape index: {}]   ;;  %s593_s2 = inlined_call_operand.vmem [shape: f32[1,128], index: 2, kind: input, shape index: {}]   ;;  %s594_s4 = inlined_call_operand.vmem [shape: f32[1,128], index: 4, kind: input, shape index: {}]   ;;  %s595_s6 = inlined_call_operand.vmem [shape: f32[1,128], index: 6, kind: input, shape index: {}]   ;;  %s596_s7 = inlined_call_operand.vmem [shape: f32[16,128], index: 7, kind: output, shape index: {}]  }
   0x1   :  { %382 = vmatprep.subr.bf16.mxu0 %v451_v0  ;;  %v432_v1 = vld [vmem:[%s589_s1 + $0x8] sm:$0xff]   ;;  %386 = vmatprep.mubr.msk.bf16.mxu0 %vm452_vm0, %v451_v0  ;;  %v433_v2 = vld [vmem:[%s589_s1] sm:$0xff]   ;;  %v435_v3 = vld [vmem:[%s590_s3 + $0x38] sm:$0xff]  }
   0x2   :  { %390 = vmatprep.subr.bf16.mxu1 %v451_v0  ;;  %406 = vmatprep.mubr.msk.bf16.mxu1 %vm452_vm0, %v451_v0  ;;  %v434_v4 = vld [vmem:[%s591_s0] sm:$0xff]   ;;  %v436_v5 = vld [vmem:[%s590_s3 + $0x30] sm:$0xff]   ;;  %v437_v6 = vld [vmem:[%s590_s3 + $0x28] sm:$0xff]  }
   0x3   :  { %383 = vmatpush3.bf16.msra.mxu0 %v432_v1  ;;  %391 = vmatpush3.bf16.msra.mxu1 %v435_v3  ;;  %v438_v7 = vld [vmem:[%s590_s3 + $0x20] sm:$0xff]   ;;  %v439_v8 = vld [vmem:[%s590_s3 + $0x18] sm:$0xff]   ;;  %v440_v9 = vld [vmem:[%s590_s3 + $0x10] sm:$0xff]  }
   0x4   :  { %384 = vmatprep.subr.bf16.mxu0 %v451_v0  ;;  %392 = vmatprep.subr.bf16.mxu1 %v451_v0  ;;  %v441_v10 = vld [vmem:[%s590_s3 + $0x8] sm:$0xff]   ;;  %v442_v11 = vld [vmem:[%s590_s3] sm:$0xff]   ;;  %v443_v12 = vld [vmem:[%s592_s5 + $0x38] sm:$0xff]  }
   0x5   :  { %v444_v13 = vld [vmem:[%s592_s5 + $0x30] sm:$0xff]   ;;  %v445_v14 = vld [vmem:[%s592_s5 + $0x28] sm:$0xff]   ;;  %v446_v15 = vld [vmem:[%s592_s5 + $0x20] sm:$0xff]  }
   0x6   :  { %v447_v16 = vld [vmem:[%s592_s5 + $0x18] sm:$0xff]   ;;  %v338_v17 = vld [vmem:[%s593_s2] ss:$0 sm:$0xff]  ;;  %v448_v27 = vld [vmem:[%s592_s5 + $0x10] sm:$0xff]  }
   0x7   :  { %385 = vmatpush3.bf16.msra.mxu0 %v433_v2  ;;  %393 = vmatpush3.bf16.msra.mxu1 %v436_v5  ;;  %v449_v28 = vld [vmem:[%s592_s5 + $0x8] sm:$0xff]   ;;  %v450_v29 = vld [vmem:[%s592_s5] sm:$0xff]  }
   0x8   :  { %410 = vmatprep.subr.bf16.mxu0 %v451_v0  ;;  %394 = vmatprep.subr.bf16.mxu1 %v451_v0  ;;  %v343_v30 = vld [vmem:[%s594_s4] ss:$0 sm:$0xff] }
   0x9   :  { %v352_v40 = vld [vmem:[%s595_s6] ss:$0 sm:$0xff] }
   0xa   :  { %387 = vmatmul.mubr.msk.bf16.vlgmr.msra.gmra.mxu0 %vm57_vm1, %v434_v4 }
   0xb   :  { %426 = vmatprep.mubr.msk.bf16.mxu0 %vm452_vm0, %v451_v0  ;;  %395 = vmatpush3.bf16.msra.mxu1 %v437_v6 }
   0xc   :  { %396 = vmatprep.subr.bf16.mxu1 %v451_v0  ;;  %411 = vmatpush3.bf16.msra.mxu0 %v443_v12 }
   0xd   :  { %412 = vmatprep.subr.bf16.mxu0 %v451_v0 }
   0xf   :  { %397 = vmatpush3.bf16.msra.mxu1 %v438_v7 }
  0x10   :  { %398 = vmatprep.subr.bf16.mxu1 %v451_v0  ;;  %413 = vmatpush3.bf16.msra.mxu0 %v444_v13 }
  0x11   :  { %414 = vmatprep.subr.bf16.mxu0 %v451_v0 }
  0x13   :  { %399 = vmatpush3.bf16.msra.mxu1 %v439_v8 }
  0x14   :  { %400 = vmatprep.subr.bf16.mxu1 %v451_v0  ;;  %415 = vmatpush3.bf16.msra.mxu0 %v445_v14 }
  0x15   :  { %416 = vmatprep.subr.bf16.mxu0 %v451_v0 }
  0x17   :  { %401 = vmatpush3.bf16.msra.mxu1 %v440_v9 }
  0x18   :  { %402 = vmatprep.subr.bf16.mxu1 %v451_v0  ;;  %417 = vmatpush3.bf16.msra.mxu0 %v446_v15 }
  0x19   :  { %418 = vmatprep.subr.bf16.mxu0 %v451_v0 }
  0x1b   :  { %403 = vmatpush3.bf16.msra.mxu1 %v441_v10 }
  0x1c   :  { %404 = vmatprep.subr.bf16.mxu1 %v451_v0  ;;  %419 = vmatpush3.bf16.msra.mxu0 %v447_v16 }
  0x1d   :  { %420 = vmatprep.subr.bf16.mxu0 %v451_v0 }
  0x1f   :  { %405 = vmatpush3.bf16.msra.mxu1 %v442_v11 }
  0x20   :  { %421 = vmatpush3.bf16.msra.mxu0 %v448_v27 }
  0x21   :  { %422 = vmatprep.subr.bf16.mxu0 %v451_v0 }
  0x24   :  { %423 = vmatpush3.bf16.msra.mxu0 %v449_v28 }
  0x25   :  { %424 = vmatprep.subr.bf16.mxu0 %v451_v0 }
  0x28   :  { %425 = vmatpush3.bf16.msra.mxu0 %v450_v29 }
  0xca   :  { %v95_v18 = vpop.f32.mrf.mxu0 }
  0xcb   :  { %v96_v20 = vadd.f32 %v338_v17, %v95_v18 }
  0xcc   :  { %v388_v19 = vpop.f32.mrf.mxu0 }
  0xcd   :  { %v102_v24 = vmax.f32 %v96_v20, 0.0 }
  0xce   :  { %v98_v21 = vpop.f32.mrf.mxu0 }
  0xcf   :  { %v99_v22 = vadd.f32 %v338_v17, %v98_v21 }
  0xd0   :  { %v389_v23 = vpop.f32.mrf.mxu0 }
  0xd1   :  { %v103_v25 = vmax.f32 %v99_v22, 0.0 }
  0xd3   :  { %v104_v26 = vpack.c.bf16 %v103_v25, %v102_v24 }
  0xd5   :  { %407 = vmatmul.mubr.bf16.vlgmr.msra.gmra.mxu1 %v104_v26 }
 0x195   :  { %v210_v31 = vpop.f32.mrf.mxu1 }
 0x196   :  { %v211_v33 = vadd.f32 %v343_v30, %v210_v31 }
 0x197   :  { %v408_v32 = vpop.f32.mrf.mxu1 }
 0x198   :  { %v217_v37 = vmax.f32 %v211_v33, 0.0 }
 0x199   :  { %v213_v34 = vpop.f32.mrf.mxu1 }
 0x19a   :  { %v214_v35 = vadd.f32 %v343_v30, %v213_v34 }
 0x19b   :  { %v409_v36 = vpop.f32.mrf.mxu1 }
 0x19c   :  { %v218_v38 = vmax.f32 %v214_v35, 0.0 }
 0x19e   :  { %v219_v39 = vpack.c.bf16 %v218_v38, %v217_v37 }
 0x1a0   :  { %427 = vmatmul.mubr.bf16.vlgmr.msra.gmra.mxu0 %v219_v39 }
 0x260   :  { %v325_v41 = vpop.f32.mrf.mxu0 }
 0x261   :  { %v326_v42 = vadd.f32 %v352_v40, %v325_v41 }
 0x262   :  { %v428_v43 = vpop.f32.mrf.mxu0 }
 0x263   :  { %332 = vst [vmem:[%s596_s7] sm:$0xff] %v326_v42 }
 0x264   :  { %v328_v44 = vpop.f32.mrf.mxu0 }
 0x265   :  { %v329_v45 = vadd.f32 %v352_v40, %v328_v44 }
 0x266   :  { %v429_v46 = vpop.f32.mrf.mxu0 }
 0x267   :  { %333 = vst [vmem:[%s596_s7 + $0x8] sm:$0xff] %v329_v45 }

</bundles_post_ra>
